<compile_context>
chip_gen: v7x
topology: tpu7x:2x2x1
jax: 0.10.0
libtpu: 0.0.40
codegen_flags: <defaults>
</compile_context>

<pallas_src>
import math
import functools

import jax
import jax.numpy as jnp
from jax import lax
from jax.experimental import pallas as pl
from jax.experimental.pallas import tpu as pltpu


# --------------------------------------------------------------------- helpers

def _round_up(x, m):
    return ((x + m - 1) // m) * m


@functools.lru_cache(maxsize=1)
def _vmem_capacity_bytes():
    try:
        return int(pltpu.get_tpu_info().vmem_capacity_bytes)
    except Exception:          # conservative default (matches v7x per-TC VMEM)
        return 64 * 1024 * 1024


def _vmem_limit_bytes():
    # Leave ~25% headroom for compiler-internal scratch: ~48 MiB on v7x (64 MiB
    # VMEM), ~96 MiB on v5e/v6e (128 MiB VMEM).
    return int(min(_vmem_capacity_bytes() * 3 // 4, 96 * 1024 * 1024))


def _row_tile_pref():
    # Bigger row tiles on 128 MiB-VMEM chips (v5e/v6e), smaller on v7x.
    return 1024 if _vmem_capacity_bytes() >= 96 * 1024 * 1024 else 512


def _pick_row_tile(m, pref):
    """Largest candidate <= min(m, pref) dividing m.  m is padded to a multiple of 8
    before this is called, so the grid never collapses to a single step for large m."""
    for t in (1024, 512, 256, 128, 64, 32, 16, 8):
        if t <= min(m, pref) and m % t == 0:
            return t
    return m


def _pad_seq(x, t_pad):
    b, t, c = x.shape
    if t_pad == t:
        return x
    return jnp.pad(x, ((0, 0), (0, t_pad - t), (0, 0)))


_CONTRACT_LAST = (((1,), (1,)), ((), ()))   # x:(M,K) @ w:(N,K) -> (M,N), no in-kernel .T


# --------------------------------------------- kernel 1: fused Q/K/V projection

def _qkv_proj_kernel(xq_ref, xk_ref, xv_ref, w_ref, b_ref, q_ref, k_ref, v_ref):
    # One row-tile of all three projections per grid step.  Weights arrive in bf16
    # (N, K) layout; activations are cast to bf16 for the MXU, accumulation in f32.
    for x_ref, o_ref, idx in ((xq_ref, q_ref, 0), (xk_ref, k_ref, 1), (xv_ref, v_ref, 2)):
        y = lax.dot_general(x_ref[...].astype(jnp.bfloat16), w_ref[idx],
                            _CONTRACT_LAST, preferred_element_type=jnp.float32)
        o_ref[...] = (y + b_ref[idx]).astype(o_ref.dtype)


def pallas_qkv_proj(xq, xk, xv, w3_bf16, b3):
    """xq/xk/xv: (M, C) f32 (same M); w3_bf16: (3, C, C) bf16; b3: (3, 1, C) f32."""
    M, C = xq.shape
    tm = _pick_row_tile(M, _row_tile_pref())
    row = pl.BlockSpec((tm, C), lambda i: (i, 0))
    # TODO(synk): for very large C (>= 2048) also tile the weight's N dim so the
    # double-buffered (C, C) block does not dominate VMEM on v7x.
    return pl.pallas_call(
        _qkv_proj_kernel,
        out_shape=tuple(jax.ShapeDtypeStruct((M, C), xq.dtype) for _ in range(3)),
        grid=(M // tm,),
        in_specs=[row, row, row,
                  pl.BlockSpec((3, C, C), lambda i: (0, 0, 0)),
                  pl.BlockSpec((3, 1, C), lambda i: (0, 0, 0))],
        out_specs=tuple(pl.BlockSpec((tm, C), lambda i: (i, 0)) for _ in range(3)),
        compiler_params=pltpu.CompilerParams(
            dimension_semantics=("parallel",),
            vmem_limit_bytes=_vmem_limit_bytes()),
    )(xq, xk, xv, w3_bf16, b3)


def _linear_kernel(x_ref, w_ref, b_ref, o_ref):
    y = lax.dot_general(x_ref[...].astype(jnp.bfloat16), w_ref[...],
                        _CONTRACT_LAST, preferred_element_type=jnp.float32)
    o_ref[...] = (y + b_ref[...]).astype(o_ref.dtype)


def pallas_linear(x, w_bf16, b):
    """x: (M, K) f32; w_bf16: (N, K) bf16; b: (1, N) f32 -> (M, N) f32 (row-tiled)."""
    M, K = x.shape
    N = w_bf16.shape[0]
    tm = _pick_row_tile(M, _row_tile_pref())
    return pl.pallas_call(
        _linear_kernel,
        out_shape=jax.ShapeDtypeStruct((M, N), x.dtype),
        grid=(M // tm,),
        in_specs=[pl.BlockSpec((tm, K), lambda i: (i, 0)),
                  pl.BlockSpec((N, K), lambda i: (0, 0)),
                  pl.BlockSpec((1, N), lambda i: (0, 0))],
        out_specs=pl.BlockSpec((tm, N), lambda i: (i, 0)),
        compiler_params=pltpu.CompilerParams(
            dimension_semantics=("parallel",),
            vmem_limit_bytes=_vmem_limit_bytes()),
    )(x, w_bf16, b)


# ------------- kernel 2: attention + out-proj + block-diagonal LoRA delta

def _fused_attn_lora_kernel(q_ref, k_ref, v_ref, x_ref, wo_ref, wd_ref, bo_ref,
                            out_ref, w_ref, o_scr, *, num_heads, head_dim, scaling):
    H, hd = num_heads, head_dim
    Tk = k_ref.shape[0]
    tq = q_ref.shape[0]

    q = q_ref[...]            # (tq, C) projected query rows for this (batch, tile)
    k = k_ref[...]            # (Tk, C)
    v = v_ref[...]            # (Tk, C)

    w_acc = jnp.zeros((tq, Tk), jnp.float32)
    for h in range(H):        # static unroll; per-head outputs go straight to scratch
        sl = slice(h * hd, (h + 1) * hd)
        s = lax.dot_general(q[:, sl].astype(jnp.bfloat16),
                            k[:, sl].astype(jnp.bfloat16),
                            _CONTRACT_LAST, preferred_element_type=jnp.float32) * scaling
        s = s - jnp.max(s, axis=-1, keepdims=True)
        e = jnp.exp(s)
        p = e / jnp.sum(e, axis=-1, keepdims=True)     # exact divide: weights sum to 1
        w_acc = w_acc + p
        o_scr[:, sl] = jnp.dot(p.astype(jnp.bfloat16), v[:, sl].astype(jnp.bfloat16),
                               preferred_element_type=jnp.float32)

    # head-averaged attention weights (PyTorch average_attn_weights=True), averaged
    # in-kernel so only (tq, Tk) f32 per step goes back to HBM.
    # TODO(synk): pad Tk to a multiple of 128 (or skip this output when the caller
    # passes need_weights=False) to avoid masked partial stores at long Tk.
    w_ref[...] = (w_acc * (1.0 / H)).astype(w_ref.dtype)

    # fused output projection (lane-dense (tq, C) x (C, C) on the MXU)
    out = lax.dot_general(o_scr[...].astype(jnp.bfloat16), wo_ref[...],
                          _CONTRACT_LAST, preferred_element_type=jnp.float32) + bo_ref[...]

    # head-wise LoRA delta on the RAW query, as one matmul against the precomputed
    # block-diagonal W_delta (scale already folded in), added after the out-proj.
    delta = lax.dot_general(x_ref[...].astype(jnp.bfloat16), wd_ref[...],
                            _CONTRACT_LAST, preferred_element_type=jnp.float32)
    out_ref[...] = (out + delta).astype(out_ref.dtype)


def pallas_fused_attention_lora(qp, kp, vp, x_raw, wo_bf16, wd_bf16, bo, *,
                                num_heads, head_dim, scaling, tq):
    B, Tq_pad, C = qp.shape
    Tk = kp.shape[1]
    kernel = functools.partial(_fused_attn_lora_kernel, num_heads=num_heads,
                               head_dim=head_dim, scaling=scaling)

    q_spec = pl.BlockSpec((None, tq, C), lambda b, qi: (b, qi, 0))
    kv_spec = pl.BlockSpec((None, Tk, C), lambda b, qi: (b, 0, 0))     # revisited per batch
    # TODO(synk): for very long Tk add a flash-style streaming Tk axis (online softmax)
    # so K/V need not be resident in full; not needed at these working-set sizes.
    # TODO(synk): a further fusion would compute the Q/K/V projections inside this
    # kernel per (batch, tq) block, removing the qp/kp/vp HBM round trip entirely.
    return pl.pallas_call(
        kernel,
        out_shape=(jax.ShapeDtypeStruct((B, Tq_pad, C), qp.dtype),
                   jax.ShapeDtypeStruct((B, Tq_pad, Tk), jnp.float32)),
        grid=(B, Tq_pad // tq),
        in_specs=[q_spec, kv_spec, kv_spec, q_spec,                    # qp, kp, vp, raw q
                  pl.BlockSpec((C, C), lambda b, qi: (0, 0)),          # Wo   (bf16)
                  pl.BlockSpec((C, C), lambda b, qi: (0, 0)),          # W_delta (bf16)
                  pl.BlockSpec((1, C), lambda b, qi: (0, 0))],         # bo
        out_specs=(q_spec,
                   pl.BlockSpec((None, tq, Tk), lambda b, qi: (b, qi, 0))),
        scratch_shapes=[pltpu.VMEM((tq, C), jnp.float32)],
        compiler_params=pltpu.CompilerParams(
            dimension_semantics=("parallel", "parallel"),
            vmem_limit_bytes=_vmem_limit_bytes()),
    )(qp, kp, vp, x_raw, wo_bf16, wd_bf16, bo)


# ---------------------------------------------------------------- forward pass

def headwise_lora_forward(query, key, value, params, num_heads, rank, alpha):
    """HeadwiseLoRA.forward: frozen batch-first MultiheadAttention + per-head LoRA
    delta on the raw query.  Returns (out (B,Tq,C), attn_w (B,Tq,Tk))."""
    B, Tq, C = query.shape
    Tk = key.shape[1]
    hd = C // num_heads
    lora_scale = alpha / rank
    scaling = 1.0 / math.sqrt(hd)

    # Pad sequence dims to multiples of 8 / the Tq tile so row grids pipeline cleanly.
    tq = min(256, _round_up(Tq, 8))
    Tq_pad = _round_up(Tq, tq)
    Tk_pad = _round_up(Tk, 8)
    q_in = _pad_seq(query, Tq_pad)
    k_in = _pad_seq(key, Tk_pad)
    v_in = _pad_seq(value, Tk_pad)

    # Frozen MHA weights: bf16 for the MXU / halved DMA bytes; biases stay f32.
    w3 = params["in_proj_weight"].reshape(3, C, C).astype(jnp.bfloat16)
    b3 = params["in_proj_bias"].reshape(3, 1, C)

    if k_in.shape == q_in.shape and v_in.shape == q_in.shape:
        # One fused QKV-projection launch, gridded over row tiles (no jnp.stack copy).
        qp, kp, vp = pallas_qkv_proj(q_in.reshape(B * Tq_pad, C),
                                     k_in.reshape(B * Tk_pad, C),
                                     v_in.reshape(B * Tk_pad, C), w3, b3)
    else:
        # Cross-attention with differing padded lengths: separate gridded calls.
        qp = pallas_linear(q_in.reshape(B * Tq_pad, C), w3[0], b3[0])
        kp = pallas_linear(k_in.reshape(B * Tk_pad, C), w3[1], b3[1])
        vp = pallas_linear(v_in.reshape(B * Tk_pad, C), w3[2], b3[2])
    qp = qp.reshape(B, Tq_pad, C)
    kp = kp.reshape(B, Tk_pad, C)
    vp = vp.reshape(B, Tk_pad, C)
    if Tk_pad != Tk:                      # padded keys must not enter the softmax
        kp, vp = kp[:, :Tk], vp[:, :Tk]

    # Block-diagonal head-wise LoRA weight (scale folded in), stored transposed so the
    # kernel uses the same contract-last dot as the (N, K) out-proj weight:
    # delta = x @ blockdiag_h(A_h @ B_h) * (alpha/rank).
    w_heads_t = jnp.einsum('hdr,hre->hed', params["A"], params["B_mat"]) * lora_scale
    wd = jnp.zeros((num_heads, hd, num_heads, hd), jnp.float32)
    wd = wd.at[jnp.arange(num_heads), :, jnp.arange(num_heads), :].set(w_heads_t)
    wd = wd.reshape(C, C).astype(jnp.bfloat16)

    out, attn_w = pallas_fused_attention_lora(
        qp, kp, vp, q_in,
        params["out_proj_weight"].astype(jnp.bfloat16),
        wd,
        params["out_proj_bias"].reshape(1, C),
        num_heads=num_heads, head_dim=hd, scaling=scaling, tq=tq)

    if Tq_pad != Tq:
        out, attn_w = out[:, :Tq], attn_w[:, :Tq]
    return out, attn_w


# ---------------------------------------------------------------- plain-JAX ref

def reference_forward(query, key, value, params, num_heads, rank, alpha):
    B, T, E = query.shape
    hd = E // num_heads
    Wq, Wk, Wv = jnp.split(params["in_proj_weight"], 3, axis=0)
    bq, bk, bv = jnp.split(params["in_proj_bias"], 3, axis=0)
    q = query @ Wq.T + bq
    k = key @ Wk.T + bk
    v = value @ Wv.T + bv
    qh = q.reshape(B, T, num_heads, hd).transpose(0, 2, 1, 3)
    kh = k.reshape(B, T, num_heads, hd).transpose(0, 2, 1, 3)
    vh = v.reshape(B, T, num_heads, hd).transpose(0, 2, 1, 3)
    s = jnp.einsum('bhqd,bhkd->bhqk', qh, kh) / math.sqrt(hd)
    p = jax.nn.softmax(s, axis=-1)
    oh = jnp.einsum('bhqk,bhkd->bhqd', p, vh)
    o = oh.transpose(0, 2, 1, 3).reshape(B, T, E)
    out = o @ params["out_proj_weight"].T + params["out_proj_bias"]
    attn_w = p.mean(axis=1)
    qh_in = query.reshape(B, T, num_heads, hd).transpose(0, 2, 1, 3)
    delta = jnp.einsum('bhtd,hdr,hre->bhte', qh_in,
                       params["A"], params["B_mat"]) * (alpha / rank)
    delta = delta.transpose(0, 2, 1, 3).reshape(B, T, E)
    return out + delta, attn_w


# ----------------------------------------------------------------------- main

if __name__ == "__main__":
    # Small shapes implied by the forward: (B, T, C) with C = num_heads * head_dim.
    Bsz, T, num_heads, head_dim = 2, 8, 4, 8
    C = num_heads * head_dim          # embed_dim = 32
    rank, alpha = 2, 1.0

    key0 = jax.random.PRNGKey(0)
    k_q, k_k, k_v, k_w1, k_b1, k_w2, k_b2, k_A, k_B = jax.random.split(key0, 9)

    query = jax.random.normal(k_q, (Bsz, T, C), jnp.float32)
    key_in = jax.random.normal(k_k, (Bsz, T, C), jnp.float32)
    value = jax.random.normal(k_v, (Bsz, T, C), jnp.float32)

    params = {
        # frozen nn.MultiheadAttention parameters (synthetic deterministic init)
        "in_proj_weight": 0.05 * jax.random.normal(k_w1, (3 * C, C), jnp.float32),
        "in_proj_bias": 0.05 * jax.random.normal(k_b1, (3 * C,), jnp.float32),
        "out_proj_weight": 0.05 * jax.random.normal(k_w2, (C, C), jnp.float32),
        "out_proj_bias": 0.05 * jax.random.normal(k_b2, (C,), jnp.float32),
        # LoRA params: A ~ randn*0.02 (as in __init__).  The module inits B to zeros;
        # a small random B is used here so the LoRA path is numerically exercised.
        "A": 0.02 * jax.random.normal(k_A, (num_heads, head_dim, rank), jnp.float32),
        "B_mat": 0.02 * jax.random.normal(k_B, (num_heads, rank, head_dim), jnp.float32),
    }

    fwd = jax.jit(functools.partial(headwise_lora_forward,
                                    num_heads=num_heads, rank=rank, alpha=alpha))
    out, attn_w = fwd(query, key_in, value, params)
    out = jax.block_until_ready(out)
    attn_w = jax.block_until_ready(attn_w)

    ref_out, ref_w = reference_forward(query, key_in, value, params,
                                       num_heads, rank, alpha)
    assert out.shape == (Bsz, T, C) and attn_w.shape == (Bsz, T, T)
    # Tolerance accounts for bf16 MXU operands (f32 accumulation) in the Pallas path.
    assert jnp.allclose(out, ref_out, atol=2e-2, rtol=2e-2), \
        f"out mismatch: {jnp.max(jnp.abs(out - ref_out))}"
    assert jnp.allclose(attn_w, ref_w, atol=2e-2, rtol=2e-2), \
        f"attn_w mismatch: {jnp.max(jnp.abs(attn_w - ref_w))}"

    print("KERNEL_OK")
</pallas_src>

<mosaic_0001>
module attributes {stable_mosaic.version = 11 : i64} {
  func.func @_qkv_proj_kernel(%arg0: i32, %arg1: memref<16x32xf32, #tpu.memory_space<vmem>>, %arg2: memref<16x32xf32, #tpu.memory_space<vmem>>, %arg3: memref<16x32xf32, #tpu.memory_space<vmem>>, %arg4: memref<3x32x32xbf16, #tpu.memory_space<vmem>>, %arg5: memref<3x1x32xf32, #tpu.memory_space<vmem>>, %arg6: memref<16x32xf32, #tpu.memory_space<vmem>>, %arg7: memref<16x32xf32, #tpu.memory_space<vmem>>, %arg8: memref<16x32xf32, #tpu.memory_space<vmem>>) attributes {dimension_semantics = [#tpu.dimension_semantics<parallel>], iteration_bounds = array<i64: 1>, scalar_prefetch = 0 : i64, scratch_operands = 0 : i64, tpu.core_type = #tpu.core_type<tc>, window_params = [{transform_indices = @transform_0, window_bounds = array<i64: 16, 32>}, {transform_indices = @transform_1, window_bounds = array<i64: 16, 32>}, {transform_indices = @transform_2, window_bounds = array<i64: 16, 32>}, {pipeline_mode = #tpu.pipeline_mode<synchronous>, transform_indices = @transform_3, window_bounds = array<i64: 3, 32, 32>}, {pipeline_mode = #tpu.pipeline_mode<synchronous>, transform_indices = @transform_4, window_bounds = array<i64: 3, 1, 32>}, {transform_indices = @transform_5, window_bounds = array<i64: 16, 32>}, {transform_indices = @transform_6, window_bounds = array<i64: 16, 32>}, {transform_indices = @transform_7, window_bounds = array<i64: 16, 32>}]} {
    %c0 = arith.constant 0 : index
    %c0_0 = arith.constant 0 : index
    %0 = vector.load %arg1[%c0, %c0_0] : memref<16x32xf32, #tpu.memory_space<vmem>>, vector<16x32xf32>
    %1 = arith.truncf %0 : vector<16x32xf32> to vector<16x32xbf16>
    %c0_1 = arith.constant 0 : index
    %c0_2 = arith.constant 0 : index
    %c0_3 = arith.constant 0 : index
    %2 = vector.load %arg4[%c0_1, %c0_2, %c0_3] : memref<3x32x32xbf16, #tpu.memory_space<vmem>>, vector<1x32x32xbf16>
    %3 = vector.shape_cast %2 : vector<1x32x32xbf16> to vector<32x32xbf16>
    %cst = arith.constant dense<0.000000e+00> : vector<16x32xf32>
    %4 = tpu.matmul %1, %3, %cst {dimension_numbers = #tpu.dot_dimension_numbers<[1], [1], [0], [0], [0, 0, 1, 0], [], []>} : vector<16x32xbf16>, vector<32x32xbf16>, vector<16x32xf32> -> vector<16x32xf32>
    %c0_4 = arith.constant 0 : index
    %c0_5 = arith.constant 0 : index
    %c0_6 = arith.constant 0 : index
    %5 = vector.load %arg5[%c0_4, %c0_5, %c0_6] : memref<3x1x32xf32, #tpu.memory_space<vmem>>, vector<1x1x32xf32>
    %6 = vector.shape_cast %5 : vector<1x1x32xf32> to vector<1x32xf32>
    %7 = vector.broadcast %6 : vector<1x32xf32> to vector<16x32xf32>
    %8 = arith.addf %4, %7 : vector<16x32xf32>
    %c0_7 = arith.constant 0 : index
    %c0_8 = arith.constant 0 : index
    %9 = vector.load %arg6[%c0_7, %c0_8] : memref<16x32xf32, #tpu.memory_space<vmem>>, vector<16x32xf32>
    tpu.vector_store %arg6[%c0_7, %c0_8], %8 {strides = array<i32>} : memref<16x32xf32, #tpu.memory_space<vmem>>, vector<16x32xf32>,
    %c0_9 = arith.constant 0 : index
    %c0_10 = arith.constant 0 : index
    %10 = vector.load %arg2[%c0_9, %c0_10] : memref<16x32xf32, #tpu.memory_space<vmem>>, vector<16x32xf32>
    %11 = arith.truncf %10 : vector<16x32xf32> to vector<16x32xbf16>
    %c1 = arith.constant 1 : index
    %c0_11 = arith.constant 0 : index
    %c0_12 = arith.constant 0 : index
    %12 = vector.load %arg4[%c1, %c0_11, %c0_12] : memref<3x32x32xbf16, #tpu.memory_space<vmem>>, vector<1x32x32xbf16>
    %13 = vector.shape_cast %12 : vector<1x32x32xbf16> to vector<32x32xbf16>
    %cst_13 = arith.constant dense<0.000000e+00> : vector<16x32xf32>
    %14 = tpu.matmul %11, %13, %cst_13 {dimension_numbers = #tpu.dot_dimension_numbers<[1], [1], [0], [0], [0, 0, 1, 0], [], []>} : vector<16x32xbf16>, vector<32x32xbf16>, vector<16x32xf32> -> vector<16x32xf32>
    %c1_14 = arith.constant 1 : index
    %c0_15 = arith.constant 0 : index
    %c0_16 = arith.constant 0 : index
    %15 = vector.load %arg5[%c1_14, %c0_15, %c0_16] : memref<3x1x32xf32, #tpu.memory_space<vmem>>, vector<1x1x32xf32>
    %16 = vector.shape_cast %15 : vector<1x1x32xf32> to vector<1x32xf32>
    %17 = vector.broadcast %16 : vector<1x32xf32> to vector<16x32xf32>
    %18 = arith.addf %14, %17 : vector<16x32xf32>
    %c0_17 = arith.constant 0 : index
    %c0_18 = arith.constant 0 : index
    %19 = vector.load %arg7[%c0_17, %c0_18] : memref<16x32xf32, #tpu.memory_space<vmem>>, vector<16x32xf32>
    tpu.vector_store %arg7[%c0_17, %c0_18], %18 {strides = array<i32>} : memref<16x32xf32, #tpu.memory_space<vmem>>, vector<16x32xf32>,
    %c0_19 = arith.constant 0 : index
    %c0_20 = arith.constant 0 : index
    %20 = vector.load %arg3[%c0_19, %c0_20] : memref<16x32xf32, #tpu.memory_space<vmem>>, vector<16x32xf32>
    %21 = arith.truncf %20 : vector<16x32xf32> to vector<16x32xbf16>
    %c2 = arith.constant 2 : index
    %c0_21 = arith.constant 0 : index
    %c0_22 = arith.constant 0 : index
    %22 = vector.load %arg4[%c2, %c0_21, %c0_22] : memref<3x32x32xbf16, #tpu.memory_space<vmem>>, vector<1x32x32xbf16>
    %23 = vector.shape_cast %22 : vector<1x32x32xbf16> to vector<32x32xbf16>
    %cst_23 = arith.constant dense<0.000000e+00> : vector<16x32xf32>
    %24 = tpu.matmul %21, %23, %cst_23 {dimension_numbers = #tpu.dot_dimension_numbers<[1], [1], [0], [0], [0, 0, 1, 0], [], []>} : vector<16x32xbf16>, vector<32x32xbf16>, vector<16x32xf32> -> vector<16x32xf32>
    %c2_24 = arith.constant 2 : index
    %c0_25 = arith.constant 0 : index
    %c0_26 = arith.constant 0 : index
    %25 = vector.load %arg5[%c2_24, %c0_25, %c0_26] : memref<3x1x32xf32, #tpu.memory_space<vmem>>, vector<1x1x32xf32>
    %26 = vector.shape_cast %25 : vector<1x1x32xf32> to vector<1x32xf32>
    %27 = vector.broadcast %26 : vector<1x32xf32> to vector<16x32xf32>
    %28 = arith.addf %24, %27 : vector<16x32xf32>
    %c0_27 = arith.constant 0 : index
    %c0_28 = arith.constant 0 : index
    %29 = vector.load %arg8[%c0_27, %c0_28] : memref<16x32xf32, #tpu.memory_space<vmem>>, vector<16x32xf32>
    tpu.vector_store %arg8[%c0_27, %c0_28], %28 {strides = array<i32>} : memref<16x32xf32, #tpu.memory_space<vmem>>, vector<16x32xf32>,
    return
  }
  func.func @transform_0(%arg0: i32) -> (i32, i32) {
    %c0_i32 = arith.constant 0 : i32
    %c0_i32_0 = arith.constant 0 : i32
    return %arg0, %c0_i32 : i32, i32
  }
  func.func @transform_1(%arg0: i32) -> (i32, i32) {
    %c0_i32 = arith.constant 0 : i32
    %c0_i32_0 = arith.constant 0 : i32
    return %arg0, %c0_i32 : i32, i32
  }
  func.func @transform_2(%arg0: i32) -> (i32, i32) {
    %c0_i32 = arith.constant 0 : i32
    %c0_i32_0 = arith.constant 0 : i32
    return %arg0, %c0_i32 : i32, i32
  }
  func.func @transform_3(%arg0: i32) -> (i32, i32, i32) {
    %c0_i32 = arith.constant 0 : i32
    %c0_i32_0 = arith.constant 0 : i32
    %c0_i32_1 = arith.constant 0 : i32
    %c0_i32_2 = arith.constant 0 : i32
    return %c0_i32, %c0_i32_0, %c0_i32_1 : i32, i32, i32
  }
  func.func @transform_4(%arg0: i32) -> (i32, i32, i32) {
    %c0_i32 = arith.constant 0 : i32
    %c0_i32_0 = arith.constant 0 : i32
    %c0_i32_1 = arith.constant 0 : i32
    %c0_i32_2 = arith.constant 0 : i32
    return %c0_i32, %c0_i32_0, %c0_i32_1 : i32, i32, i32
  }
  func.func @transform_5(%arg0: i32) -> (i32, i32) {
    %c0_i32 = arith.constant 0 : i32
    %c0_i32_0 = arith.constant 0 : i32
    return %arg0, %c0_i32 : i32, i32
  }
  func.func @transform_6(%arg0: i32) -> (i32, i32) {
    %c0_i32 = arith.constant 0 : i32
    %c0_i32_0 = arith.constant 0 : i32
    return %arg0, %c0_i32 : i32, i32
  }
  func.func @transform_7(%arg0: i32) -> (i32, i32) {
    %c0_i32 = arith.constant 0 : i32
    %c0_i32_0 = arith.constant 0 : i32
    return %arg0, %c0_i32 : i32, i32
  }
}

module attributes {stable_mosaic.version = 11 : i64} {
  func.func @_fused_attn_lora_kernel(%arg0: i32, %arg1: i32, %arg2: memref<1x8x32xf32, #tpu.memory_space<vmem>>, %arg3: memref<1x8x32xf32, #tpu.memory_space<vmem>>, %arg4: memref<1x8x32xf32, #tpu.memory_space<vmem>>, %arg5: memref<1x8x32xf32, #tpu.memory_space<vmem>>, %arg6: memref<32x32xbf16, #tpu.memory_space<vmem>>, %arg7: memref<32x32xbf16, #tpu.memory_space<vmem>>, %arg8: memref<1x32xf32, #tpu.memory_space<vmem>>, %arg9: memref<1x8x32xf32, #tpu.memory_space<vmem>>, %arg10: memref<1x8x8xf32, #tpu.memory_space<vmem>>, %arg11: memref<8x32xf32, #tpu.memory_space<vmem>>) attributes {dimension_semantics = [#tpu.dimension_semantics<parallel>, #tpu.dimension_semantics<parallel>], iteration_bounds = array<i64: 2, 1>, scalar_prefetch = 0 : i64, scratch_operands = 1 : i64, tpu.core_type = #tpu.core_type<tc>, window_params = [{transform_indices = @transform_0, window_bounds = array<i64: 1, 8, 32>}, {transform_indices = @transform_1, window_bounds = array<i64: 1, 8, 32>}, {transform_indices = @transform_2, window_bounds = array<i64: 1, 8, 32>}, {transform_indices = @transform_3, window_bounds = array<i64: 1, 8, 32>}, {pipeline_mode = #tpu.pipeline_mode<synchronous>, transform_indices = @transform_4, window_bounds = array<i64: 32, 32>}, {pipeline_mode = #tpu.pipeline_mode<synchronous>, transform_indices = @transform_5, window_bounds = array<i64: 32, 32>}, {pipeline_mode = #tpu.pipeline_mode<synchronous>, transform_indices = @transform_6, window_bounds = array<i64: 1, 32>}, {transform_indices = @transform_7, window_bounds = array<i64: 1, 8, 32>}, {transform_indices = @transform_8, window_bounds = array<i64: 1, 8, 8>}]} {
    %c0 = arith.constant 0 : index
    %c0_0 = arith.constant 0 : index
    %c0_1 = arith.constant 0 : index
    %0 = vector.load %arg2[%c0, %c0_0, %c0_1] : memref<1x8x32xf32, #tpu.memory_space<vmem>>, vector<1x8x32xf32>
    %1 = vector.shape_cast %0 : vector<1x8x32xf32> to vector<8x32xf32>
    %c0_2 = arith.constant 0 : index
    %c0_3 = arith.constant 0 : index
    %c0_4 = arith.constant 0 : index
    %2 = vector.load %arg3[%c0_2, %c0_3, %c0_4] : memref<1x8x32xf32, #tpu.memory_space<vmem>>, vector<1x8x32xf32>
    %3 = vector.shape_cast %2 : vector<1x8x32xf32> to vector<8x32xf32>
    %c0_5 = arith.constant 0 : index
    %c0_6 = arith.constant 0 : index
    %c0_7 = arith.constant 0 : index
    %4 = vector.load %arg4[%c0_5, %c0_6, %c0_7] : memref<1x8x32xf32, #tpu.memory_space<vmem>>, vector<1x8x32xf32>
    %5 = vector.shape_cast %4 : vector<1x8x32xf32> to vector<8x32xf32>
    %cst = arith.constant 0.000000e+00 : f32
    %6 = vector.broadcast %cst : f32 to vector<8x8xf32>
    %7 = vector.extract_strided_slice %1 {offsets = [0, 0], sizes = [8, 8], strides = [1, 1]} : vector<8x32xf32> to vector<8x8xf32>
    %8 = arith.truncf %7 : vector<8x8xf32> to vector<8x8xbf16>
    %9 = vector.extract_strided_slice %3 {offsets = [0, 0], sizes = [8, 8], strides = [1, 1]} : vector<8x32xf32> to vector<8x8xf32>
    %10 = arith.truncf %9 : vector<8x8xf32> to vector<8x8xbf16>
    %cst_8 = arith.constant dense<0.000000e+00> : vector<8x8xf32>
    %11 = tpu.matmul %8, %10, %cst_8 {dimension_numbers = #tpu.dot_dimension_numbers<[1], [1], [0], [0], [0, 0, 1, 0], [], []>} : vector<8x8xbf16>, vector<8x8xbf16>, vector<8x8xf32> -> vector<8x8xf32>
    %cst_9 = arith.constant 0.353553385 : f32
    %12 = vector.broadcast %cst_9 : f32 to vector<8x8xf32>
    %13 = arith.mulf %11, %12 : vector<8x8xf32>
    %cst_10 = arith.constant dense<0xFF800000> : vector<8xf32>
    %14 = vector.multi_reduction <maximumf>, %13, %cst_10 [1] : vector<8x8xf32> to vector<8xf32>
    %15 = vector.shape_cast %14 : vector<8xf32> to vector<8x1xf32>
    %16 = vector.broadcast %15 : vector<8x1xf32> to vector<8x8xf32>
    %17 = arith.subf %13, %16 : vector<8x8xf32>
    %18 = math.exp %17 : vector<8x8xf32>
    %cst_11 = arith.constant dense<0.000000e+00> : vector<8xf32>
    %19 = vector.multi_reduction <add>, %18, %cst_11 [1] : vector<8x8xf32> to vector<8xf32>
    %20 = vector.shape_cast %19 : vector<8xf32> to vector<8x1xf32>
    %21 = vector.broadcast %20 : vector<8x1xf32> to vector<8x8xf32>
    %22 = arith.divf %18, %21 : vector<8x8xf32>
    %23 = arith.addf %6, %22 : vector<8x8xf32>
    %24 = arith.truncf %22 : vector<8x8xf32> to vector<8x8xbf16>
    %25 = vector.extract_strided_slice %5 {offsets = [0, 0], sizes = [8, 8], strides = [1, 1]} : vector<8x32xf32> to vector<8x8xf32>
    %26 = arith.truncf %25 : vector<8x8xf32> to vector<8x8xbf16>
    %cst_12 = arith.constant dense<0.000000e+00> : vector<8x8xf32>
    %27 = tpu.matmul %24, %26, %cst_12 {dimension_numbers = #tpu.dot_dimension_numbers<[1], [0], [0], [1], [0, 0, 1, 1], [], []>} : vector<8x8xbf16>, vector<8x8xbf16>, vector<8x8xf32> -> vector<8x8xf32>
    %c0_13 = arith.constant 0 : index
    %c0_14 = arith.constant 0 : index
    %28 = vector.load %arg11[%c0_13, %c0_14] : memref<8x32xf32, #tpu.memory_space<vmem>>, vector<8x8xf32>
    tpu.vector_store %arg11[%c0_13, %c0_14], %27 {strides = array<i32>} : memref<8x32xf32, #tpu.memory_space<vmem>>, vector<8x8xf32>,
    %29 = vector.extract_strided_slice %1 {offsets = [0, 8], sizes = [8, 8], strides = [1, 1]} : vector<8x32xf32> to vector<8x8xf32>
    %30 = arith.truncf %29 : vector<8x8xf32> to vector<8x8xbf16>
    %31 = vector.extract_strided_slice %3 {offsets = [0, 8], sizes = [8, 8], strides = [1, 1]} : vector<8x32xf32> to vector<8x8xf32>
    %32 = arith.truncf %31 : vector<8x8xf32> to vector<8x8xbf16>
    %cst_15 = arith.constant dense<0.000000e+00> : vector<8x8xf32>
    %33 = tpu.matmul %30, %32, %cst_15 {dimension_numbers = #tpu.dot_dimension_numbers<[1], [1], [0], [0], [0, 0, 1, 0], [], []>} : vector<8x8xbf16>, vector<8x8xbf16>, vector<8x8xf32> -> vector<8x8xf32>
    %cst_16 = arith.constant 0.353553385 : f32
    %34 = vector.broadcast %cst_16 : f32 to vector<8x8xf32>
    %35 = arith.mulf %33, %34 : vector<8x8xf32>
    %cst_17 = arith.constant dense<0xFF800000> : vector<8xf32>
    %36 = vector.multi_reduction <maximumf>, %35, %cst_17 [1] : vector<8x8xf32> to vector<8xf32>
    %37 = vector.shape_cast %36 : vector<8xf32> to vector<8x1xf32>
    %38 = vector.broadcast %37 : vector<8x1xf32> to vector<8x8xf32>
    %39 = arith.subf %35, %38 : vector<8x8xf32>
    %40 = math.exp %39 : vector<8x8xf32>
    %cst_18 = arith.constant dense<0.000000e+00> : vector<8xf32>
    %41 = vector.multi_reduction <add>, %40, %cst_18 [1] : vector<8x8xf32> to vector<8xf32>
    %42 = vector.shape_cast %41 : vector<8xf32> to vector<8x1xf32>
    %43 = vector.broadcast %42 : vector<8x1xf32> to vector<8x8xf32>
    %44 = arith.divf %40, %43 : vector<8x8xf32>
    %45 = arith.addf %23, %44 : vector<8x8xf32>
    %46 = arith.truncf %44 : vector<8x8xf32> to vector<8x8xbf16>
    %47 = vector.extract_strided_slice %5 {offsets = [0, 8], sizes = [8, 8], strides = [1, 1]} : vector<8x32xf32> to vector<8x8xf32>
    %48 = arith.truncf %47 : vector<8x8xf32> to vector<8x8xbf16>
    %cst_19 = arith.constant dense<0.000000e+00> : vector<8x8xf32>
    %49 = tpu.matmul %46, %48, %cst_19 {dimension_numbers = #tpu.dot_dimension_numbers<[1], [0], [0], [1], [0, 0, 1, 1], [], []>} : vector<8x8xbf16>, vector<8x8xbf16>, vector<8x8xf32> -> vector<8x8xf32>
    %c0_20 = arith.constant 0 : index
    %c8 = arith.constant 8 : index
    %50 = vector.load %arg11[%c0_20, %c8] : memref<8x32xf32, #tpu.memory_space<vmem>>, vector<8x8xf32>
    tpu.vector_store %arg11[%c0_20, %c8], %49 {strides = array<i32>} : memref<8x32xf32, #tpu.memory_space<vmem>>, vector<8x8xf32>,
    %51 = vector.extract_strided_slice %1 {offsets = [0, 16], sizes = [8, 8], strides = [1, 1]} : vector<8x32xf32> to vector<8x8xf32>
    %52 = arith.truncf %51 : vector<8x8xf32> to vector<8x8xbf16>
    %53 = vector.extract_strided_slice %3 {offsets = [0, 16], sizes = [8, 8], strides = [1, 1]} : vector<8x32xf32> to vector<8x8xf32>
    %54 = arith.truncf %53 : vector<8x8xf32> to vector<8x8xbf16>
    %cst_21 = arith.constant dense<0.000000e+00> : vector<8x8xf32>
    %55 = tpu.matmul %52, %54, %cst_21 {dimension_numbers = #tpu.dot_dimension_numbers<[1], [1], [0], [0], [0, 0, 1, 0], [], []>} : vector<8x8xbf16>, vector<8x8xbf16>, vector<8x8xf32> -> vector<8x8xf32>
    %cst_22 = arith.constant 0.353553385 : f32
    %56 = vector.broadcast %cst_22 : f32 to vector<8x8xf32>
    %57 = arith.mulf %55, %56 : vector<8x8xf32>
    %cst_23 = arith.constant dense<0xFF800000> : vector<8xf32>
    %58 = vector.multi_reduction <maximumf>, %57, %cst_23 [1] : vector<8x8xf32> to vector<8xf32>
    %59 = vector.shape_cast %58 : vector<8xf32> to vector<8x1xf32>
    %60 = vector.broadcast %59 : vector<8x1xf32> to vector<8x8xf32>
    %61 = arith.subf %57, %60 : vector<8x8xf32>
    %62 = math.exp %61 : vector<8x8xf32>
    %cst_24 = arith.constant dense<0.000000e+00> : vector<8xf32>
    %63 = vector.multi_reduction <add>, %62, %cst_24 [1] : vector<8x8xf32> to vector<8xf32>
    %64 = vector.shape_cast %63 : vector<8xf32> to vector<8x1xf32>
    %65 = vector.broadcast %64 : vector<8x1xf32> to vector<8x8xf32>
    %66 = arith.divf %62, %65 : vector<8x8xf32>
    %67 = arith.addf %45, %66 : vector<8x8xf32>
    %68 = arith.truncf %66 : vector<8x8xf32> to vector<8x8xbf16>
    %69 = vector.extract_strided_slice %5 {offsets = [0, 16], sizes = [8, 8], strides = [1, 1]} : vector<8x32xf32> to vector<8x8xf32>
    %70 = arith.truncf %69 : vector<8x8xf32> to vector<8x8xbf16>
    %cst_25 = arith.constant dense<0.000000e+00> : vector<8x8xf32>
    %71 = tpu.matmul %68, %70, %cst_25 {dimension_numbers = #tpu.dot_dimension_numbers<[1], [0], [0], [1], [0, 0, 1, 1], [], []>} : vector<8x8xbf16>, vector<8x8xbf16>, vector<8x8xf32> -> vector<8x8xf32>
    %c0_26 = arith.constant 0 : index
    %c16 = arith.constant 16 : index
    %72 = vector.load %arg11[%c0_26, %c16] : memref<8x32xf32, #tpu.memory_space<vmem>>, vector<8x8xf32>
    tpu.vector_store %arg11[%c0_26, %c16], %71 {strides = array<i32>} : memref<8x32xf32, #tpu.memory_space<vmem>>, vector<8x8xf32>,
    %73 = vector.extract_strided_slice %1 {offsets = [0, 24], sizes = [8, 8], strides = [1, 1]} : vector<8x32xf32> to vector<8x8xf32>
    %74 = arith.truncf %73 : vector<8x8xf32> to vector<8x8xbf16>
    %75 = vector.extract_strided_slice %3 {offsets = [0, 24], sizes = [8, 8], strides = [1, 1]} : vector<8x32xf32> to vector<8x8xf32>
    %76 = arith.truncf %75 : vector<8x8xf32> to vector<8x8xbf16>
    %cst_27 = arith.constant dense<0.000000e+00> : vector<8x8xf32>
    %77 = tpu.matmul %74, %76, %cst_27 {dimension_numbers = #tpu.dot_dimension_numbers<[1], [1], [0], [0], [0, 0, 1, 0], [], []>} : vector<8x8xbf16>, vector<8x8xbf16>, vector<8x8xf32> -> vector<8x8xf32>
    %cst_28 = arith.constant 0.353553385 : f32
    %78 = vector.broadcast %cst_28 : f32 to vector<8x8xf32>
    %79 = arith.mulf %77, %78 : vector<8x8xf32>
    %cst_29 = arith.constant dense<0xFF800000> : vector<8xf32>
    %80 = vector.multi_reduction <maximumf>, %79, %cst_29 [1] : vector<8x8xf32> to vector<8xf32>
    %81 = vector.shape_cast %80 : vector<8xf32> to vector<8x1xf32>
    %82 = vector.broadcast %81 : vector<8x1xf32> to vector<8x8xf32>
    %83 = arith.subf %79, %82 : vector<8x8xf32>
    %84 = math.exp %83 : vector<8x8xf32>
    %cst_30 = arith.constant dense<0.000000e+00> : vector<8xf32>
    %85 = vector.multi_reduction <add>, %84, %cst_30 [1] : vector<8x8xf32> to vector<8xf32>
    %86 = vector.shape_cast %85 : vector<8xf32> to vector<8x1xf32>
    %87 = vector.broadcast %86 : vector<8x1xf32> to vector<8x8xf32>
    %88 = arith.divf %84, %87 : vector<8x8xf32>
    %89 = arith.addf %67, %88 : vector<8x8xf32>
    %90 = arith.truncf %88 : vector<8x8xf32> to vector<8x8xbf16>
    %91 = vector.extract_strided_slice %5 {offsets = [0, 24], sizes = [8, 8], strides = [1, 1]} : vector<8x32xf32> to vector<8x8xf32>
    %92 = arith.truncf %91 : vector<8x8xf32> to vector<8x8xbf16>
    %cst_31 = arith.constant dense<0.000000e+00> : vector<8x8xf32>
    %93 = tpu.matmul %90, %92, %cst_31 {dimension_numbers = #tpu.dot_dimension_numbers<[1], [0], [0], [1], [0, 0, 1, 1], [], []>} : vector<8x8xbf16>, vector<8x8xbf16>, vector<8x8xf32> -> vector<8x8xf32>
    %c0_32 = arith.constant 0 : index
    %c24 = arith.constant 24 : index
    %94 = vector.load %arg11[%c0_32, %c24] : memref<8x32xf32, #tpu.memory_space<vmem>>, vector<8x8xf32>
    tpu.vector_store %arg11[%c0_32, %c24], %93 {strides = array<i32>} : memref<8x32xf32, #tpu.memory_space<vmem>>, vector<8x8xf32>,
    %cst_33 = arith.constant 2.500000e-01 : f32
    %95 = vector.broadcast %cst_33 : f32 to vector<8x8xf32>
    %96 = arith.mulf %89, %95 : vector<8x8xf32>
    %c0_34 = arith.constant 0 : index
    %c0_35 = arith.constant 0 : index
    %c0_36 = arith.constant 0 : index
    %97 = vector.load %arg10[%c0_34, %c0_35, %c0_36] : memref<1x8x8xf32, #tpu.memory_space<vmem>>, vector<1x8x8xf32>
    %98 = vector.shape_cast %97 : vector<1x8x8xf32> to vector<8x8xf32>
    %99 = vector.shape_cast %96 : vector<8x8xf32> to vector<1x8x8xf32>
    tpu.vector_store %arg10[%c0_34, %c0_35, %c0_36], %99 {strides = array<i32>} : memref<1x8x8xf32, #tpu.memory_space<vmem>>, vector<1x8x8xf32>,
    %c0_37 = arith.constant 0 : index
    %c0_38 = arith.constant 0 : index
    %100 = vector.load %arg11[%c0_37, %c0_38] : memref<8x32xf32, #tpu.memory_space<vmem>>, vector<8x32xf32>
    %101 = arith.truncf %100 : vector<8x32xf32> to vector<8x32xbf16>
    %c0_39 = arith.constant 0 : index
    %c0_40 = arith.constant 0 : index
    %102 = vector.load %arg6[%c0_39, %c0_40] : memref<32x32xbf16, #tpu.memory_space<vmem>>, vector<32x32xbf16>
    %cst_41 = arith.constant dense<0.000000e+00> : vector<8x32xf32>
    %103 = tpu.matmul %101, %102, %cst_41 {dimension_numbers = #tpu.dot_dimension_numbers<[1], [1], [0], [0], [0, 0, 1, 0], [], []>} : vector<8x32xbf16>, vector<32x32xbf16>, vector<8x32xf32> -> vector<8x32xf32>
    %c0_42 = arith.constant 0 : index
    %c0_43 = arith.constant 0 : index
    %104 = vector.load %arg8[%c0_42, %c0_43] : memref<1x32xf32, #tpu.memory_space<vmem>>, vector<1x32xf32>
    %105 = vector.broadcast %104 : vector<1x32xf32> to vector<8x32xf32>
    %106 = arith.addf %103, %105 : vector<8x32xf32>
    %c0_44 = arith.constant 0 : index
    %c0_45 = arith.constant 0 : index
    %c0_46 = arith.constant 0 : index
    %107 = vector.load %arg5[%c0_44, %c0_45, %c0_46] : memref<1x8x32xf32, #tpu.memory_space<vmem>>, vector<1x8x32xf32>
    %108 = vector.shape_cast %107 : vector<1x8x32xf32> to vector<8x32xf32>
    %109 = arith.truncf %108 : vector<8x32xf32> to vector<8x32xbf16>
    %c0_47 = arith.constant 0 : index
    %c0_48 = arith.constant 0 : index
    %110 = vector.load %arg7[%c0_47, %c0_48] : memref<32x32xbf16, #tpu.memory_space<vmem>>, vector<32x32xbf16>
    %cst_49 = arith.constant dense<0.000000e+00> : vector<8x32xf32>
    %111 = tpu.matmul %109, %110, %cst_49 {dimension_numbers = #tpu.dot_dimension_numbers<[1], [1], [0], [0], [0, 0, 1, 0], [], []>} : vector<8x32xbf16>, vector<32x32xbf16>, vector<8x32xf32> -> vector<8x32xf32>
    %112 = arith.addf %106, %111 : vector<8x32xf32>
    %c0_50 = arith.constant 0 : index
    %c0_51 = arith.constant 0 : index
    %c0_52 = arith.constant 0 : index
    %113 = vector.load %arg9[%c0_50, %c0_51, %c0_52] : memref<1x8x32xf32, #tpu.memory_space<vmem>>, vector<1x8x32xf32>
    %114 = vector.shape_cast %113 : vector<1x8x32xf32> to vector<8x32xf32>
    %115 = vector.shape_cast %112 : vector<8x32xf32> to vector<1x8x32xf32>
    tpu.vector_store %arg9[%c0_50, %c0_51, %c0_52], %115 {strides = array<i32>} : memref<1x8x32xf32, #tpu.memory_space<vmem>>, vector<1x8x32xf32>,
    return
  }
  func.func @transform_0(%arg0: i32, %arg1: i32) -> (i32, i32, i32) {
    %c0_i32 = arith.constant 0 : i32
    %c0_i32_0 = arith.constant 0 : i32
    return %arg0, %arg1, %c0_i32 : i32, i32, i32
  }
  func.func @transform_1(%arg0: i32, %arg1: i32) -> (i32, i32, i32) {
    %c0_i32 = arith.constant 0 : i32
    %c0_i32_0 = arith.constant 0 : i32
    %c0_i32_1 = arith.constant 0 : i32
    return %arg0, %c0_i32, %c0_i32_0 : i32, i32, i32
  }
  func.func @transform_2(%arg0: i32, %arg1: i32) -> (i32, i32, i32) {
    %c0_i32 = arith.constant 0 : i32
    %c0_i32_0 = arith.constant 0 : i32
    %c0_i32_1 = arith.constant 0 : i32
    return %arg0, %c0_i32, %c0_i32_0 : i32, i32, i32
  }
  func.func @transform_3(%arg0: i32, %arg1: i32) -> (i32, i32, i32) {
    %c0_i32 = arith.constant 0 : i32
    %c0_i32_0 = arith.constant 0 : i32
    return %arg0, %arg1, %c0_i32 : i32, i32, i32
  }
  func.func @transform_4(%arg0: i32, %arg1: i32) -> (i32, i32) {
    %c0_i32 = arith.constant 0 : i32
    %c0_i32_0 = arith.constant 0 : i32
    %c0_i32_1 = arith.constant 0 : i32
    return %c0_i32, %c0_i32_0 : i32, i32
  }
  func.func @transform_5(%arg0: i32, %arg1: i32) -> (i32, i32) {
    %c0_i32 = arith.constant 0 : i32
    %c0_i32_0 = arith.constant 0 : i32
    %c0_i32_1 = arith.constant 0 : i32
    return %c0_i32, %c0_i32_0 : i32, i32
  }
  func.func @transform_6(%arg0: i32, %arg1: i32) -> (i32, i32) {
    %c0_i32 = arith.constant 0 : i32
    %c0_i32_0 = arith.constant 0 : i32
    %c0_i32_1 = arith.constant 0 : i32
    return %c0_i32, %c0_i32_0 : i32, i32
  }
  func.func @transform_7(%arg0: i32, %arg1: i32) -> (i32, i32, i32) {
    %c0_i32 = arith.constant 0 : i32
    %c0_i32_0 = arith.constant 0 : i32
    return %arg0, %arg1, %c0_i32 : i32, i32, i32
  }
  func.func @transform_8(%arg0: i32, %arg1: i32) -> (i32, i32, i32) {
    %c0_i32 = arith.constant 0 : i32
    %c0_i32_0 = arith.constant 0 : i32
    return %arg0, %arg1, %c0_i32 : i32, i32, i32
  }
}

</mosaic_0001>

<bundles_post_ra>
// kernel: headwise_lora_forward.2
= control target key start
LH: loop header
LB: loop body
LE: loop exit
PB: predicated region body
PF: predicated region fallthrough
CT: control target
= control target key end

     0   :  { %vm48_vm0 = vcmask 261120   ;;  %v332_v0 = vmov 0.0   ;;  %vm333_vm1 = vmmov 0   ;;  %s455_s3 = inlined_call_operand.vmem [shape: bf16[3,32,32], index: 3, kind: input, shape index: {}]   ;;  %s456_s0 = inlined_call_operand.vmem [shape: f32[16,32], index: 0, kind: input, shape index: {}]   ;;  %s457_s1 = inlined_call_operand.vmem [shape: f32[16,32], index: 1, kind: input, shape index: {}]   ;;  %s458_s2 = inlined_call_operand.vmem [shape: f32[16,32], index: 2, kind: input, shape index: {}]   ;;  %s459_s4 = inlined_call_operand.vmem [shape: f32[3,1,32], index: 4, kind: input, shape index: {}]   ;;  %s460_s5 = inlined_call_operand.vmem [shape: f32[16,32], index: 5, kind: output, shape index: {0}]   ;;  %s461_s6 = inlined_call_operand.vmem [shape: f32[16,32], index: 6, kind: output, shape index: {1}]   ;;  %s462_s7 = inlined_call_operand.vmem [shape: f32[16,32], index: 7, kind: output, shape index: {2}]  }
   0x1   :  { %300 = vmatprep.subr.bf16.mxu0 %v332_v0  ;;  %v326_v1 = vld [vmem:[%s455_s3] sm:$0xff]   ;;  %308 = vmatprep.subr.bf16.mxu1 %v332_v0  ;;  %v328_v3 = vld [vmem:[%s455_s3 + $0x10] sm:$0xff]   ;;  %v327_v4 = vld [vmem:[%s455_s3 + $0x8] sm:$0xff]  }
   0x2   :  { %304 = vmatprep.mubr.msk.bf16.mxu0 %vm333_vm1, %v332_v0  ;;  %312 = vmatprep.mubr.msk.bf16.mxu1 %vm333_vm1, %v332_v0  ;;  %v53_v2 = vsel %vm48_vm0, %v326_v1, 0  ;;  %v131_v5 = vsel %vm48_vm0, %v328_v3, 0  ;;  %v330_v6 = vld [vmem:[%s455_s3 + $0x18] sm:$0xff]   ;;  %v56_v7 = vsel %vm48_vm0, %v327_v4, 0  ;;  %v24_v9 = vld [vmem:[%s456_s0] sm:$0xff]  ;;  %v25_v10 = vld [vmem:[%s456_s0 + $0x8] sm:$0xff] }
   0x3   :  { %301 = vmatpush3.bf16.xpose.msra.mxu0 %v53_v2  ;;  %309 = vmatpush3.bf16.xpose.msra.mxu1 %v131_v5  ;;  %v134_v8 = vsel %vm48_vm0, %v330_v6, 0  ;;  %v329_v11 = vld [vmem:[%s455_s3 + $0x20] sm:$0xff]   ;;  %v102_v13 = vld [vmem:[%s457_s1 + $0x8] sm:$0xff]  ;;  %v26_v14 = vpack.c.bf16 %v25_v10, %v24_v9 }
   0x4   :  { %302 = vmatprep.subr.bf16.mxu0 %v332_v0  ;;  %310 = vmatprep.subr.bf16.mxu1 %v332_v0  ;;  %v101_v12 = vld [vmem:[%s457_s1] sm:$0xff]  ;;  %v209_v15 = vsel %vm48_vm0, %v329_v11, 0  ;;  %v331_v17 = vld [vmem:[%s455_s3 + $0x28] sm:$0xff]  }
   0x5   :  { %v103_v16 = vpack.c.bf16 %v102_v13, %v101_v12  ;;  %v212_v18 = vsel %vm48_vm0, %v331_v17, 0  ;;  %v179_v19 = vld [vmem:[%s458_s2] sm:$0xff]  ;;  %v180_v20 = vld [vmem:[%s458_s2 + $0x8] sm:$0xff] }
   0x6   :  { %v181_v21 = vpack.c.bf16 %v180_v20, %v179_v19  ;;  %v269_v22 = vld [vmem:[%s459_s4] ss:$0 sm:$0xff]  ;;  %v278_v24 = vld [vmem:[%s459_s4 + $0x1] ss:$0 sm:$0xff]  ;;  %v287_v36 = vld [vmem:[%s459_s4 + $0x2] ss:$0 sm:$0xff] }
   0xb   :  { %303 = vmatpush3.bf16.xpose.msra.mxu0 %v56_v7  ;;  %311 = vmatpush3.bf16.xpose.msra.mxu1 %v134_v8 }
   0xc   :  { %316 = vmatprep.subr.bf16.mxu0 %v332_v0 }
  0x12   :  { %305 = vmatmul.mubr.msk.bf16.vlgmr.msra.gmra.mrb[0].mxu0 %vm48_vm0, %v26_v14  ;;  %313 = vmatmul.mubr.msk.bf16.vlgmr.msra.gmra.mrb[0].mxu1 %vm48_vm0, %v103_v16 }
  0x13   :  { %317 = vmatpush3.bf16.xpose.msra.mxu0 %v209_v15  ;;  %320 = vmatprep.mubr.msk.bf16.mxu0 %vm333_vm1, %v332_v0 }
  0x14   :  { %318 = vmatprep.subr.bf16.mxu0 %v332_v0 }
  0x1b   :  { %319 = vmatpush3.bf16.xpose.msra.mxu0 %v212_v18 }
  0x22   :  { %321 = vmatmul.mubr.msk.bf16.vlgmr.msra.gmra.mrb[4].mxu0 %vm48_vm0, %v181_v21 }
  0xe5   :  { %v92_v23 = vpop.f32.mrb[0].mxu0  ;;  %v170_v28 = vpop.f32.mrb[0].mxu1 }
  0xe6   :  { %v93_v25 = vadd.f32 %v269_v22, %v92_v23  ;;  %v306_v26 = vpop.f32.mrb[1].mxu0  ;;  %v171_v31 = vadd.f32 %v278_v24, %v170_v28  ;;  %v314_v32 = vpop.f32.mrb[1].mxu1 }
  0xe7   :  { %v95_v27 = vpop.f32.mrb[2].mxu0  ;;  %v173_v33 = vpop.f32.mrb[2].mxu1 }
  0xe8   :  { %99 = vst.msk [vmem:[%s460_s5] sm:$0xff] %vm48_vm0, %v93_v25  ;;  %v96_v29 = vadd.f32 %v269_v22, %v95_v27  ;;  %v307_v30 = vpop.f32.mrb[3].mxu0  ;;  %177 = vst.msk [vmem:[%s461_s6] sm:$0xff] %vm48_vm0, %v171_v31  ;;  %v174_v34 = vadd.f32 %v278_v24, %v173_v33  ;;  %v315_v35 = vpop.f32.mrb[3].mxu1 }
  0xea   :  { %100 = vst.msk [vmem:[%s460_s5 + $0x8] sm:$0xff] %vm48_vm0, %v96_v29  ;;  %178 = vst.msk [vmem:[%s461_s6 + $0x8] sm:$0xff] %vm48_vm0, %v174_v34 }
  0xf5   :  { %v248_v37 = vpop.f32.mrb[4].mxu0 }
  0xf6   :  { %v249_v38 = vadd.f32 %v287_v36, %v248_v37  ;;  %v322_v39 = vpop.f32.mrb[5].mxu0 }
  0xf7   :  { %v251_v40 = vpop.f32.mrb[6].mxu0 }
  0xf8   :  { %255 = vst.msk [vmem:[%s462_s7] sm:$0xff] %vm48_vm0, %v249_v38  ;;  %v252_v41 = vadd.f32 %v287_v36, %v251_v40  ;;  %v323_v42 = vpop.f32.mrb[7].mxu0 }
  0xfa   :  { %256 = vst.msk [vmem:[%s462_s7 + $0x8] sm:$0xff] %vm48_vm0, %v252_v41 }

// kernel: headwise_lora_forward.3
= control target key start
LH: loop header
LB: loop body
LE: loop exit
PB: predicated region body
PF: predicated region fallthrough
CT: control target
= control target key end

     0   :  { %s1834_s0 = inlined_call_operand.vmem [shape: f32[2,8,32], index: 0, kind: input, shape index: {}]   ;;  %s1835_s1 = inlined_call_operand.vmem [shape: f32[2,8,32], index: 1, kind: input, shape index: {}]   ;;  %s1836_s2 = inlined_call_operand.vmem [shape: f32[2,8,32], index: 2, kind: input, shape index: {}]   ;;  %s1837_s3 = inlined_call_operand.vmem [shape: f32[2,8,32], index: 3, kind: input, shape index: {}]   ;;  %s1838_s4 = inlined_call_operand.vmem [shape: bf16[32,32], index: 4, kind: input, shape index: {}]   ;;  %s1839_s5 = inlined_call_operand.vmem [shape: bf16[32,32], index: 5, kind: input, shape index: {}]   ;;  %s1840_s6 = inlined_call_operand.vmem [shape: f32[1,32], index: 6, kind: input, shape index: {}]   ;;  %s1841_s7 = inlined_call_operand.hbm [shape: f32[2,8,32], index: 7, kind: output, shape index: {0}]   ;;  %s1842_s8 = inlined_call_operand.hbm [shape: f32[2,8,8], index: 8, kind: output, shape index: {1}]  }
   0x1   :  { %1845 = sst [smem:[#allocation9_spill]] %s1834_s0 }
   0x2   :  { %14 = vsyncpa [#allocation4], 0 }
   0x3   :  { %16 = vsyncpa [#allocation4 + $0x1], 0 }
   0x4   :  { %17 = vsyncpa [#allocation6], 0 }
   0x5   :  { %19 = vsyncpa [#allocation6 + $0x1], 0  ;;  %s1568_s27 = smov 0   ;;  %s1570_s28 = smov 0  }
   0x6   :  { %s1572_s29 = smov 0   ;;  %s1574_s30 = smov 0  }
   0x7   :  { %s1576_s9 = smov 0   ;;  %s1578_s10 = smov 0  }
   0x8 LB: > { %s1193_s11 = sadd.s32 4294967295, %s1511_s10   ;;  %s1194_s12 = sadd.s32 4294967294, %s1511_s10   ;;  %s1511_s10 = sphi %s1578_s10, %s25_s10   ;;  %s1507_s9 = sphi %s1576_s9, %s1855_s9   ;;  %s1503_s30 = sphi %s1574_s30, %s1854_s30   ;;  %s1499_s29 = sphi %s1572_s29, %s1853_s29   ;;  %s1495_s28 = sphi %s1570_s28, %s1852_s28   ;;  %s1491_s27 = sphi %s1568_s27, %s1851_s27  }
   0x9   : > { %s37_s13 = sadd.s32 1, %s1507_s9  ;;  %s217_s14 = sadd.s32 1, %s1499_s29 }
   0xa   : > { %p39_p0 = scmp.ge.s32.totalorder %s37_s13, 2  ;;  %p227_p1 = scmp.ne.s32.totalorder %s1499_s29, %s1495_s28 }
   0xb   : > { %p228_p2 = scmp.eq.s32.totalorder %s1193_s11, 1  ;;  %p233_p3 = scmp.ne.s32.totalorder %s1495_s28, %s1491_s27 }
   0xc   : > { %s1857_s13 = smov (%p39_p0, %s37_s13), 0  ;;  %p234_p5 = scmp.eq.s32.totalorder %s1194_s12, 1 }
   0xd   : > { %p1608_p4 = por %p228_p2, %p227_p1  ;;  %s212_s16 = ssub.s32 %s1507_s9, %s1857_s13 }
   0xe   : > { %p1197_p6 = scmp.ge.s32.totalorder %s1511_s10, 1  ;;  %p215_p7 = scmp.eq.s32.totalorder %s212_s16, 0 }
   0xf   : > { %p1615_p8 = por %p234_p5, %p233_p3  ;;  %p323_p9 = scmp.lt.s32.totalorder %s1511_s10, 3 }
  0x10   : > { %s1621_s18 = scalar_select %p215_p7, %s1499_s29, %s217_s14  }
  0x11   : > { %p324_p10 = pnand %p1197_p6, %p323_p9 }
  0x12   : > { %p379_p11 = scmp.lt.s32.totalorder (!%p324_p10), %s1503_s30, 1  ;;  %v1513_v0 = vmov (!%p324_p10), 0.0   ;;  %vm1514_vm0 = vmmov (!%p324_p10), 0   ;;  %vm407_vm1 = vcmask (!%p324_p10), 64512   ;;  %s1848_s0 = sld [smem:[#allocation9_spill]] (!%p324_p10)  ;;  %vm472_vm2 = vcmask (!%p324_p10), 1043456  }
  0x13   : > { %327 = sbr.rel (%p324_p10) target bundleno = 1729 (0x6c1), region = 48  ;;  %1247 = vmatprep.subr.bf16.mxu0 (!%p324_p10), %v1513_v0  ;;  %1249 = vmatprep.mubr.msk.bf16.mxu0 (!%p324_p10), %vm1514_vm0, %v1513_v0  ;;  %s1515_s11 = smov (!%p324_p10), 120   ;;  %vm899_vm3 = vcmask (!%p324_p10), 261120   ;;  %vm636_vm4 = vcmask (!%p324_p10), 130112   ;;  %vm754_vm5 = vcmask (!%p324_p10), 195712   ;;  %vm872_vm6 = vcmask (!%p324_p10), 261312  }
  0x14   : > { %1253 = vmatprep.subr.bf16.mxu1 (!%p324_p10), %v1513_v0  ;;  %1255 = vmatprep.mubr.msk.bf16.mxu1 (!%p324_p10), %vm1514_vm0, %v1513_v0  ;;  %s1516_s12 = smov (!%p324_p10), 112   ;;  %s1517_s14 = smov (!%p324_p10), 104  }
  0x15   : > { %s1711_s22 = sand.u32 (!%p324_p10), 1, %s1495_s28   ;;  %s1519_s16 = smov (!%p324_p10), 16  }
  0x1a   : > { %s380_s19 = scalar_select %p379_p11, %s1503_s30, 1 }
  0x1c   : > { %s1631_s20 = sshll.u32 %s380_s19, 3 }
  0x1d   : > { %s389_s23 = scalar_lea.vmem %s1835_s1, %s1631_s20  ;;  %s385_s26 = scalar_lea.vmem %s1848_s0, %s1631_s20 }
  0x1e   : > { %v403_v1 = vld [vmem:[%s389_s23] sm:$0xff]  ;;  %s393_s21 = scalar_lea.vmem %s1836_s2, %s1631_s20  ;;  %s1843_s23 = sshll.u32 %s1711_s22, 3 }
  0x1f   : > { %v406_v2 = vpack.c.bf16 %v403_v1, %v403_v1  ;;  %v402_v4 = vld [vmem:[%s385_s26] sm:$0xff]  ;;  %s1720_s24 = scalar_lea.vmem [#allocation5], %s1843_s23 }
  0x20   : > { %v405_v5 = vpack.c.bf16 %v402_v4, %v402_v4  ;;  %v404_v17 = vld [vmem:[%s393_s21] sm:$0xff]  ;;  %s1050_s26 = sshll.u32 %s1720_s24, 4  ;;  %s1051_s26 = int_to_ptr.vmem [resolvable:$true] %s1050_s26 }
  0x21   : > { %v412_v3 = vsel %vm407_vm1, %v406_v2, 0  ;;  %521 = vrot.lane.b32.xlu1 %v406_v2, %s1515_s11  ;;  %v1657_v18 = vpack.c.bf16 %v404_v17, %v404_v17 }
  0x22   : > { %1248 = vmatpush3.bf16.xpose.msra.mxu0 %v412_v3 }
  0x23   : > { %1265 = vmatprep.subr.bf16.mxu0 %v1513_v0  ;;  %v474_v19 = vsel %vm472_vm2, %v1657_v18, 0 }
  0x24   : > { %1254 = vmatpush3.bf16.msra.mxu1 %v474_v19 }
  0x25   : > { %518 = vrot.lane.b32.xlu1 %v405_v5, %s1515_s11  ;;  %1259 = vmatprep.subr.bf16.mxu1 %v1513_v0 }
  0x29   : > { %1250 = vmatmul.mubr.msk.bf16.vlgmr.msra.gmra.mrb[0].mxu0 %vm407_vm1, %v405_v5  ;;  %638 = vrot.lane.b32.xlu1 %v405_v5, %s1516_s12 }
  0x2a   : > { %1267 = vmatprep.mubr.msk.bf16.mxu0 %vm1514_vm0, %v1513_v0 }
  0x2d   : > { %758 = vrot.lane.b32.xlu1 %v406_v2, %s1517_s14 }
  0x31   : > { %756 = vrot.lane.b32.xlu1 %v405_v5, %s1517_s14 }
  0x93   : > { %v522_v22 = vpop.permute.xlu1 %521 }
  0x94   : > { %v527_v24 = vsel %vm407_vm1, %v522_v22, 0 }
  0x97   : > { %v519_v26 = vpop.permute.xlu1 %518 }
  0x9b   : > { %v639_v28 = vpop.permute.xlu1 %638 }
  0x9f   : > { %v759_v30 = vpop.permute.xlu1 %758 }
  0xa0   : > { %v764_v31 = vsel %vm407_vm1, %v759_v30, 0  ;;  %v1382_v30 = vld [vmem:[%s1838_s4] sm:$0xff]  }
  0xa3   : > { %v757_v32 = vpop.permute.xlu1 %756 }
  0xfc   : > { %v448_v6 = vpop.f32.mrb[0].mxu0 }
  0xfd   : > { %v454_v7 = vmul.f32 0.35355338, %v448_v6  ;;  %v1251_v8 = vpop.f32.mrb[1].mxu0 }
  0xfe   : > { %v451_v9 = vpop.f32.mrb[2].mxu0 }
  0xff   : > { %v1252_v10 = vpop.f32.mrb[3].mxu0  ;;  %v455_v11 = vsel %vm407_vm1, %v454_v7, -inf }
 0x100   : > { %456 = vmax.xlane.f32.xlu0 %v455_v11 }
 0x18d   : > { %v457_v12 = vpop.xlane.xlu0 %456 }
 0x18e   : > { %v458_v13 = vsub.f32 %v454_v7, %v457_v12 }
 0x190   : > { %v459_v14 = vmul.f32 1.442695, %v458_v13 }
 0x192   : > { %1385 = vpow2.f32 %v459_v14 }
 0x19c   : > { %v1386_v15 = vpop.eup %1385 }
 0x19d   : > { %v461_v16 = vsel %vm407_vm1, %v1386_v15, 0.0 }
 0x19e   : > { %462 = vadd.xlane.f32.xlu0 %v461_v16 }
 0x1b4   : > { %640 = vrot.lane.b32.xlu0 %v406_v2, %s1516_s12 }
 0x22b   : > { %v463_v20 = vpop.xlane.xlu0 %462 }
 0x22c   : > { %1387 = vrcp.f32 %v463_v20 }
 0x22f   : > { %v641_v27 = vpop.permute.xlu0 %640 }
 0x230   : > { %v646_v29 = vsel %vm407_vm1, %v641_v27, 0 }
 0x236   : > { %v1388_v21 = vpop.eup %1387 }
 0x237   : > { %v1663_v23 = vmul.f32 %v1388_v21, %v1386_v15 }
 0x239   : > { %v467_v25 = vpack.c.bf16 %v1663_v23, %v1663_v23 }
 0x23b   : > { %1256 = vmatmul.mubr.msk.bf16.vlgmr.msra.gmra.mrb[0].mxu1 %vm407_vm1, %v467_v25 }
 0x23c   : > { %1260 = vmatpush3.bf16.xpose.msra.mxu1 %v527_v24  ;;  %1261 = vmatprep.mubr.msk.bf16.mxu1 %vm1514_vm0, %v1513_v0 }
 0x23d   : > { %1271 = vmatprep.subr.bf16.mxu1 %v1513_v0 }
 0x243   : > { %1262 = vmatmul.mubr.msk.bf16.vlgmr.msra.gmra.mrb[4].mxu1 %vm407_vm1, %v519_v26 }
 0x244   : > { %1272 = vmatpush3.bf16.xpose.msra.mxu1 %v646_v29  ;;  %1273 = vmatprep.mubr.msk.bf16.mxu1 %vm1514_vm0, %v1513_v0 }
 0x245   : > { %1283 = vmatprep.subr.bf16.mxu1 %v1513_v0 }
 0x24b   : > { %1274 = vmatmul.mubr.msk.bf16.vlgmr.msra.gmra.mrb[8].mxu1 %vm407_vm1, %v639_v28 }
 0x24c   : > { %1284 = vmatpush3.bf16.xpose.msra.mxu1 %v764_v31  ;;  %1285 = vmatprep.mubr.msk.bf16.mxu1 %vm1514_vm0, %v1513_v0 }
 0x24d   : > { %1303 = vmatprep.subr.bf16.mxu1 %v1513_v0 }
 0x253   : > { %1286 = vmatmul.mubr.msk.bf16.vlgmr.msra.gmra.mrb[12].mxu1 %vm407_vm1, %v757_v32  ;;  %v904_v32 = vsel %vm899_vm3, %v1382_v30, 0 }
 0x254   : > { %1307 = vmatprep.mubr.msk.bf16.mxu1 %vm1514_vm0, %v1513_v0 }
 0x30e   : > { %v510_v33 = vpop.f32.mrb[0].mxu1 }
 0x30f   : > { %516 = vst.msk [vmem:[#allocation2] sm:$0xff] %vm407_vm1, %v510_v33  ;;  %v1257_v34 = vpop.f32.mrb[1].mxu1 }
 0x310   : > { %v513_v35 = vpop.f32.mrb[2].mxu1 }
 0x311   : > { %v1258_v36 = vpop.f32.mrb[3].mxu1 }
 0x316   : > { %v563_v37 = vpop.f32.mrb[4].mxu1 }
 0x317   : > { %v569_v38 = vmul.f32 0.35355338, %v563_v37  ;;  %v1263_v39 = vpop.f32.mrb[5].mxu1 }
 0x318   : > { %v566_v40 = vpop.f32.mrb[6].mxu1 }
 0x319   : > { %v1264_v41 = vpop.f32.mrb[7].mxu1  ;;  %v570_v42 = vsel %vm407_vm1, %v569_v38, -inf }
 0x31a   : > { %571 = vmax.xlane.f32.xlu1 %v570_v42  ;;  %v1383_v41 = vld [vmem:[%s1839_s5 + $0x8] sm:$0xff]  }
 0x31b   : > { %v1384_v42 = vld [vmem:[%s1838_s4 + $0x8] sm:$0xff]  }
 0x31e   : > { %v682_v43 = vpop.f32.mrb[8].mxu1 }
 0x31f   : > { %v688_v44 = vmul.f32 0.35355338, %v682_v43  ;;  %v1275_v45 = vpop.f32.mrb[9].mxu1  ;;  %v907_v43 = vsel %vm899_vm3, %v1384_v42, 0 }
 0x320   : > { %v685_v46 = vpop.f32.mrb[10].mxu1 }
 0x321   : > { %v689_v47 = vsel %vm407_vm1, %v688_v44, -inf  ;;  %v1276_v48 = vpop.f32.mrb[11].mxu1 }
 0x322   : > { %690 = vmax.xlane.f32.xlu0 %v689_v47 }
 0x326   : > { %v800_v49 = vpop.f32.mrb[12].mxu1 }
 0x327   : > { %v806_v50 = vmul.f32 0.35355338, %v800_v49  ;;  %v1287_v51 = vpop.f32.mrb[13].mxu1 }
 0x328   : > { %v803_v52 = vpop.f32.mrb[14].mxu1 }
 0x329   : > { %v807_v53 = vsel %vm407_vm1, %v806_v50, -inf  ;;  %v1288_v54 = vpop.f32.mrb[15].mxu1 }
 0x32a   : > { %808 = vmax.xlane.f32.xlu1 %v807_v53 }
 0x3a7   : > { %v572_v55 = vpop.xlane.xlu1 %571 }
 0x3a8   : > { %v573_v56 = vsub.f32 %v569_v38, %v572_v55 }
 0x3aa   : > { %v574_v57 = vmul.f32 1.442695, %v573_v56 }
 0x3ac   : > { %1389 = vpow2.f32 %v574_v57 }
 0x3af   : > { %v691_v58 = vpop.xlane.xlu0 %690 }
 0x3b0   : > { %v692_v59 = vsub.f32 %v688_v44, %v691_v58 }
 0x3b2   : > { %v693_v60 = vmul.f32 1.442695, %v692_v59 }
 0x3b4   : > { %1391 = vpow2.f32 %v693_v60 }
 0x3b6   : > { %v1390_v61 = vpop.eup %1389 }
 0x3b7   : > { %v576_v62 = vsel %vm407_vm1, %v1390_v61, 0.0  ;;  %v809_v2 = vpop.xlane.xlu1 %808 }
 0x3b8   : > { %577 = vadd.xlane.f32.xlu1 %v576_v62  ;;  %v810_v3 = vsub.f32 %v806_v50, %v809_v2 }
 0x3ba   : > { %v811_v4 = vmul.f32 1.442695, %v810_v3 }
 0x3bc   : > { %1393 = vpow2.f32 %v811_v4 }
 0x3be   : > { %v1392_v63 = vpop.eup %1391 }
 0x3bf   : > { %v695_v1 = vsel %vm407_vm1, %v1392_v63, 0.0 }
 0x3c0   : > { %696 = vadd.xlane.f32.xlu0 %v695_v1 }
 0x3c6   : > { %v1394_v5 = vpop.eup %1393 }
 0x3c7   : > { %v813_v6 = vsel %vm407_vm1, %v1394_v5, 0.0 }
 0x3c9   : > { %702 = vrot.lane.b32.xlu1 %v1657_v18, %s1516_s12  ;;  %s1401_s12 = scalar_lea.vmem %s1051_s26, 128 }
 0x3ca   : > { %p1402_p12 = scmp.ne.s32.totalorder %s1051_s26, %s1401_s12 }
 0x3cc   : > { %p1403_p13 = pnand %p1402_p12, %p1608_p4 }
 0x3ce   : > { %p1404_p0 = pneg %p1403_p13 }
 0x3d6   : > { %584 = vrot.lane.b32.xlu0 %v1657_v18, %s1515_s11  ;;  %s1022_s11 = scalar_lea.sflag [#allocation6], %s1711_s22 }
 0x3ed   : > { %814 = vadd.xlane.f32.xlu1 %v813_v6 }
 0x3fe   : > { %820 = vrot.lane.b32.xlu1 %v1657_v18, %s1517_s14  ;;  %s1518_s14 = smov 8  }
 0x445   : > { %v578_v7 = vpop.xlane.xlu1 %577 }
 0x446   : > { %1395 = vrcp.f32 %v578_v7 }
 0x449   : > { %v703_v13 = vpop.permute.xlu1 %702 }
 0x44a   : > { %v708_v15 = vsel %vm472_vm2, %v703_v13, 0 }
 0x44d   : > { %v697_v8 = vpop.xlane.xlu0 %696 }
 0x44e   : > { %1397 = vrcp.f32 %v697_v8 }
 0x450   : > { %v1396_v9 = vpop.eup %1395 }
 0x451   : > { %v580_v10 = vmul.f32 %v1396_v9, %v1390_v61  ;;  %v585_v11 = vpop.permute.xlu0 %584 }
 0x452   : > { %v590_v12 = vsel %vm472_vm2, %v585_v11, 0 }
 0x453   : > { %1266 = vmatpush3.bf16.msra.mxu0 %v590_v12  ;;  %v582_v14 = vpack.c.bf16 %v580_v10, %v580_v10  ;;  %v581_v22 = vadd.f32 %v580_v10, %v1663_v23  ;;  %v1381_v23 = vld [vmem:[%s1839_s5] sm:$0xff]  }
 0x454   : > { %1277 = vmatprep.subr.bf16.mxu0 %v1513_v0  ;;  %v969_v31 = vsel %vm899_vm3, %v1381_v23, 0 }
 0x455   : > { %1304 = vmatpush3.bf16.xpose.msra.mxu1 %v969_v31 }
 0x456   : > { %1268 = vmatmul.mubr.msk.bf16.vlgmr.msra.gmra.mrb[4].mxu0 %vm407_vm1, %v582_v14  ;;  %1305 = vmatprep.subr.bf16.mxu1 %v1513_v0 }
 0x457   : > { %1278 = vmatpush3.bf16.msra.mxu0 %v708_v15  ;;  %1279 = vmatprep.mubr.msk.bf16.mxu0 %vm1514_vm0, %v1513_v0 }
 0x458   : > { %v1398_v16 = vpop.eup %1397  ;;  %1289 = vmatprep.subr.bf16.mxu0 %v1513_v0 }
 0x459   : > { %v699_v17 = vmul.f32 %v1398_v16, %v1392_v63 }
 0x45b   : > { %v701_v18 = vpack.c.bf16 %v699_v17, %v699_v17  ;;  %v700_v26 = vadd.f32 %v699_v17, %v581_v22 }
 0x45e   : > { %1280 = vmatmul.mubr.msk.bf16.vlgmr.msra.gmra.mrb[8].mxu0 %vm407_vm1, %v701_v18 }
 0x45f   : > { %1291 = vmatprep.mubr.msk.bf16.mxu0 %vm1514_vm0, %v1513_v0 }
 0x47a   : > { %v815_v19 = vpop.xlane.xlu1 %814 }
 0x47b   : > { %1399 = vrcp.f32 %v815_v19 }
 0x47e   : > { %v821_v20 = vpop.permute.xlu1 %820 }
 0x47f   : > { %v826_v21 = vsel %vm472_vm2, %v821_v20, 0 }
 0x480   : > { %1290 = vmatpush3.bf16.msra.mxu0 %v826_v21 }
 0x481   : > { %1295 = vmatprep.subr.bf16.mxu0 %v1513_v0 }
 0x485   : > { %v1400_v24 = vpop.eup %1399 }
 0x486   : > { %v817_v25 = vmul.f32 %v1400_v24, %v1394_v5 }
 0x488   : > { %v819_v27 = vpack.c.bf16 %v817_v25, %v817_v25  ;;  %v818_v28 = vadd.f32 %v817_v25, %v700_v26 }
 0x48a   : > { %1292 = vmatmul.mubr.msk.bf16.vlgmr.msra.gmra.mrb[12].mxu0 %vm407_vm1, %v819_v27  ;;  %v874_v29 = vmul.f32 0.25, %v818_v28 }
 0x48b   : > { %1299 = vmatprep.mubr.msk.bf16.mxu0 %vm1514_vm0, %v1513_v0  ;;  %1296 = vmatpush3.bf16.xpose.msra.mxu0 %v904_v32 }
 0x48c   : > { %875 = vst.msk [vmem:[%s1720_s24] sm:$0xff] %vm407_vm1, %v874_v29  ;;  %1297 = vmatprep.subr.bf16.mxu0 %v1513_v0  ;;  %v972_v0 = vsel %vm899_vm3, %v1383_v41, 0 }
 0x48d   : > { %1306 = vmatpush3.bf16.xpose.msra.mxu1 %v972_v0 }
 0x493   : > { %1298 = vmatpush3.bf16.xpose.msra.mxu0 %v907_v43 }
 0x529   : > { %v626_v33 = vpop.f32.mrb[4].mxu0 }
 0x52a   : > { %633 = vrot.lane.b32.xlu0 %v626_v33, %s1518_s14  ;;  %v1269_v34 = vpop.f32.mrb[5].mxu0  ;;  %s400_s14 = scalar_lea.vmem %s1837_s3, %s1631_s20  ;;  %s1844_s20 = sshll.u32 %s1503_s30, 7 }
 0x52b   : > { %v629_v35 = vpop.f32.mrb[6].mxu0  ;;  %v949_v44 = vld [vmem:[%s400_s14] sm:$0xff]  ;;  %s1754_s25 = scalar_lea.hbm %s1842_s8, %s1844_s20  ;;  %s1521_s14 = smov [#allocation5]  }
 0x52c   : > { %v1270_v36 = vpop.f32.mrb[7].mxu0  ;;  %v950_v45 = vpack.c.bf16 %v949_v44, %v949_v44 }
 0x52e   : > { %1308 = vmatmul.mubr.msk.bf16.vlgmr.msra.gmra.mrb[16].mxu1 %vm899_vm3, %v950_v45 }
 0x531   : > { %v744_v37 = vpop.f32.mrb[8].mxu0 }
 0x532   : > { %751 = vrot.lane.b32.xlu1 %v744_v37, %s1519_s16  ;;  %v1281_v38 = vpop.f32.mrb[9].mxu0  ;;  %s1520_s16 = smov 24  }
 0x533   : > { %v747_v39 = vpop.f32.mrb[10].mxu0 }
 0x534   : > { %v1282_v40 = vpop.f32.mrb[11].mxu0 }
 0x55d   : > { %v862_v46 = vpop.f32.mrb[12].mxu0 }
 0x55e   : > { %869 = vrot.lane.b32.xlu0 %v862_v46, %s1520_s16  ;;  %v1293_v47 = vpop.f32.mrb[13].mxu0  ;;  %s1405_s16 = sshll.u32 %s1521_s14, 4  ;;  %s1406_s16 = int_to_ptr.vmem [resolvable:$false] %s1405_s16 }
 0x55f   : > { %v865_v48 = vpop.f32.mrb[14].mxu0  ;;  %s1407_s23 = scalar_lea.vmem %s1406_s16, 256  ;;  %p1408_p1 = scmp.lt.s32.totalorder %s1051_s26, %s1406_s16 }
 0x560   : > { %v1294_v49 = vpop.f32.mrb[15].mxu0  ;;  %p1409_p2 = scmp.lt.s32.totalorder %s1407_s23, %s1401_s12 }
 0x562   : > { %p1410_p3 = por %p1409_p2, %p1408_p1 }
 0x564   : > { %p1411_p5 = pnand %p1410_p3, %p1404_p0 }
 0x59c   : > { %v634_v50 = vpop.permute.xlu0 %633 }
 0x59d   : > { %637 = vst.msk [vmem:[#allocation2] sm:$0xff] %vm636_vm4, %v634_v50 }
 0x5a4   : > { %v752_v51 = vpop.permute.xlu1 %751 }
 0x5a5   : > { %755 = vst.msk [vmem:[#allocation2] sm:$0xff] %vm754_vm5, %v752_v51 }
 0x5d0   : > { %v870_v52 = vpop.permute.xlu0 %869 }
 0x5d1   : > { %873 = vst.msk [vmem:[#allocation2] sm:$0xff] %vm872_vm6, %v870_v52 }
 0x5d8   : > { %v876_v53 = vld [vmem:[#allocation2] sm:$0xff] }
 0x5d9   : > { %v877_v54 = vpack.c.bf16 %v876_v53, %v876_v53 }
 0x5db   : > { %1300 = vmatmul.mubr.msk.bf16.vlgmr.msra.gmra.mrb[16].mxu0 %vm899_vm3, %v877_v54 }
 0x601   : > { %v1008_v55 = vpop.f32.mrb[16].mxu1 }
 0x602   : > { %v1309_v56 = vpop.f32.mrb[17].mxu1 }
 0x603   : > { %v1011_v57 = vpop.f32.mrb[18].mxu1 }
 0x604   : > { %v1310_v58 = vpop.f32.mrb[19].mxu1 }
 0x605   : > { %1414 = shalt.err (!%p1411_p5)
}
 0x606   : > { %s1415_s24 = scalar_lea.hbm %s1754_s25, 128  ;;  %s1419_s14 = scalar_lea.hbm %s1842_s8, 256 }
 0x607   : > { %p1416_p6 = scmp.ne.s32.totalorder %s1754_s25, %s1415_s24  ;;  %p1420_p10 = scmp.lt.u32.totalorder %s1754_s25, %s1842_s8 }
 0x608   : > { %p1421_p11 = scmp.lt.u32.totalorder %s1419_s14, %s1415_s24  ;;  %p1423_p13 = scmp.lt.u32.totalorder %s1415_s24, %s1754_s25 }
 0x609   : > { %p1417_p7 = pnand %p1416_p6, %p1608_p4 }
 0x60a   : > { %p1422_p12 = por %p1421_p11, %p1420_p10 }
 0x60b   : > { %p1418_p9 = pneg %p1417_p7 }
 0x60c   : > { %p1424_p0 = por %p1423_p13, %p1422_p12 }
 0x60e   : > { %p1425_p1 = pnand %p1424_p0, %p1418_p9 }
 0x610   : > { %1428 = shalt.err (!%p1425_p1)
}
 0x611   : > { %1314 = dma.vmem_to_hbm [thread:$0]  (%p1608_p4), %s1051_s26, 128, %s1754_s25, %s1022_s11   ;;  %v1212_v59 = vld [vmem:[%s1840_s6] ss:$0 sm:$0xff] }
 0x612   : > { %s1849_s20 = sshll.u32 %s1711_s22, 3  ;;  %s1850_s24 = sshll.u32 %s1503_s30, 7 }
 0x613   : > { %s371_s19 = scalar_lea.vmem [#allocation3], %s1849_s20  ;;  %s1785_s0 = scalar_lea.hbm %s1841_s7, %s1850_s24 }
 0x614   : > { %s1036_s21 = sshll.u32 %s371_s19, 4  ;;  %s1017_s25 = scalar_lea.sflag [#allocation4], %s1711_s22  ;;  %s1787_s21 = int_to_ptr.vmem [resolvable:$true] %s1036_s21 }
 0x615   : > { %s1429_s26 = scalar_lea.vmem %s1787_s21, 128  ;;  %s1522_s11 = smov [#allocation3]  }
 0x616   : > { %p1430_p2 = scmp.ne.s32.totalorder %s1787_s21, %s1429_s26  ;;  %s1433_s30 = sshll.u32 %s1522_s11, 4  ;;  %s1434_s30 = int_to_ptr.vmem [resolvable:$false] %s1433_s30 }
 0x617   : > { %s1435_s23 = scalar_lea.vmem %s1434_s30, 256  ;;  %p1436_p6 = scmp.lt.s32.totalorder %s1787_s21, %s1434_s30 }
 0x618   : > { %p1431_p3 = pnand %p1430_p2, %p1608_p4  ;;  %p1437_p7 = scmp.lt.s32.totalorder %s1435_s23, %s1429_s26 }
 0x61a   : > { %p1432_p5 = pneg %p1431_p3  ;;  %p1438_p9 = por %p1437_p7, %p1436_p6 }
 0x61c   : > { %p1439_p10 = pnand %p1438_p9, %p1432_p5 }
 0x6ae   : > { %v943_v60 = vpop.f32.mrb[16].mxu0 }
 0x6af   : > { %v944_v61 = vadd.f32 %v1212_v59, %v943_v60  ;;  %v1301_v62 = vpop.f32.mrb[17].mxu0 }
 0x6b0   : > { %v946_v63 = vpop.f32.mrb[18].mxu0 }
 0x6b1   : > { %v1014_v1 = vadd.f32 %v1008_v55, %v944_v61  ;;  %v1302_v2 = vpop.f32.mrb[19].mxu0 }
 0x6b3   : > { %1015 = vst.msk [vmem:[%s371_s19] sm:$0xff] %vm899_vm3, %v1014_v1 }
 0x6b4   : > { %1442 = shalt.err (!%p1439_p10)
}
 0x6b5   : > { %s1443_s22 = scalar_lea.hbm %s1785_s0, 128  ;;  %s1447_s19 = scalar_lea.hbm %s1841_s7, 256 }
 0x6b6   : > { %p1444_p11 = scmp.ne.s32.totalorder %s1785_s0, %s1443_s22  ;;  %p1448_p0 = scmp.lt.u32.totalorder %s1785_s0, %s1841_s7 }
 0x6b7   : > { %p1449_p1 = scmp.lt.u32.totalorder %s1447_s19, %s1443_s22  ;;  %p1451_p3 = scmp.lt.u32.totalorder %s1443_s22, %s1785_s0 }
 0x6b8   : > { %p1445_p12 = pnand %p1444_p11, %p1608_p4 }
 0x6b9   : > { %p1450_p2 = por %p1449_p1, %p1448_p0 }
 0x6ba   : > { %p1446_p13 = pneg %p1445_p12 }
 0x6bb   : > { %p1452_p5 = por %p1451_p3, %p1450_p2 }
 0x6bd   : > { %p1453_p6 = pnand %p1452_p5, %p1446_p13 }
 0x6bf   : > { %1456 = shalt.err (!%p1453_p6)
}
 0x6c0   : > { %1313 = dma.vmem_to_hbm [thread:$0]  (%p1608_p4), %s1787_s21, 128, %s1785_s0, %s1017_s25  }
 0x6c1 PF: > { %p1324_p7 = scmp.ge.s32.totalorder %s1511_s10, 2  ;;  %s1062_s16 = sand.u32 1, %s1491_s27  }
 0x6c2   : > { %s1063_s26 = scalar_lea.sflag [#allocation4], %s1062_s16 }
 0x6c3   : > { %p1318_p9 = pnand %p1324_p7, %p1615_p8 }
 0x6c5   : > { %1482 = dma.done.wait (!%p1318_p9), %s1063_s26, 128  }
 0x6c6   : > { %1484 = vsyncadd (!%p1318_p9), %s1063_s26, 4294967168  ;;  %s1072_s11 = scalar_lea.sflag [#allocation6], %s1062_s16 }
 0x6c7   : > { %1486 = dma.done.wait (!%p1318_p9), %s1072_s11, 128  }
 0x6c8   : > { %1488 = vsyncadd (!%p1318_p9), %s1072_s11, 4294967168  ;;  %s25_s10 = sadd.s32 1, %s1511_s10   ;;  %s1851_s27 = smov %s1495_s28 }
 0x6c9   : > { %p22_p10 = scmp.ge.s32.totalorder %s25_s10, 4   ;;  %s1852_s28 = smov %s1499_s29 }
 0x6ca   : > { %s1853_s29 = smov %s1621_s18  ;;  %s1854_s30 = smov %s1507_s9 }
 0x6cb   : > { %s1855_s9 = smov %s1857_s13  ;;  %24 = sbr.rel (!%p22_p10) target bundleno = 8 (0x8), region = 109 }
 0x6d2   :  { %1077 = vsyncpa [#allocation4], 1 }
 0x6d3   :  { %1079 = vsyncpa [#allocation4 + $0x1], 1 }
 0x6d4   :  { %1080 = vsyncpa [#allocation6], 1 }
 0x6d5   :  { %1082 = vsyncpa [#allocation6 + $0x1], 1 }

</bundles_post_ra>
